<compile_context>
chip_gen: v7x
topology: tpu7x:2x2x1
jax: 0.10.0
libtpu: 0.0.40
codegen_flags: <defaults>
</compile_context>

<pallas_src>
import functools
import math

import jax
import jax.numpy as jnp
from jax import lax
from jax.experimental import pallas as pl
from jax.experimental.pallas import tpu as pltpu


def _pick_tile(n, candidates):
    """Largest candidate tile (multiple of 8) that divides n, else the full dim."""
    for c in candidates:
        if n % c == 0:
            return c
    return n


# --------------------------------------------------------------------------- #
# Kernel 1: fused QKV projection -> lane-dense q (B,T,C) and k|v (B,T,2C).
# --------------------------------------------------------------------------- #
def _qkv_kernel(x_ref, w_ref, b_ref, q_ref, kv_ref):
    C = q_ref.shape[-1]
    x = x_ref[0].astype(w_ref.dtype)                      # cast to compute dtype in VMEM
    # Single fused (tx, C) @ (C, 3C) matmul on the MXU, f32 accumulation, f32 bias.
    qkv = jnp.dot(x, w_ref[...], preferred_element_type=jnp.float32) + b_ref[...]
    # Two dense full-width stores (q columns already carry the 1/sqrt(D) scale).
    q_ref[0] = qkv[:, :C].astype(q_ref.dtype)
    kv_ref[0] = qkv[:, C:].astype(kv_ref.dtype)
    # TODO(synk): for very large C, tile the 3C output axis in the grid to keep the
    # resident (C,3C) weight within v7x's 64 MiB VMEM.


# --------------------------------------------------------------------------- #
# Kernel 2: causal flash attention (all heads in-kernel) + single output projection.
# grid = (B, num_q_tiles, num_kv_tiles); kv axis is "arbitrary" (resident output +
# online-softmax scratch carried across it).
# --------------------------------------------------------------------------- #
def _flash_kernel(q_ref, kv_ref, wp_ref, bp_ref, o_ref,
                  m_sc, l_sc, acc_sc, y_sc, *, n_head, head_dim, tq, tk):
    qi = pl.program_id(1)
    kv = pl.program_id(2)
    D = head_dim
    C = n_head * D

    # Last kv tile with any causal overlap for this q tile; later tiles are skipped
    # (their BlockSpec index is clamped in the wrapper -> no DMA either).
    last_kv = (qi * tq + tq - 1) // tk

    # Reset online-softmax state at the start of every (b, qi) sweep.
    @pl.when(kv == 0)
    def _():
        m_sc[...] = jnp.full_like(m_sc, -jnp.inf)
        l_sc[...] = jnp.zeros_like(l_sc)
        acc_sc[...] = jnp.zeros_like(acc_sc)

    @pl.when(kv <= last_kv)
    def _():
        qblk = q_ref[0]                                    # (tq, C)   compute dtype
        kvblk = kv_ref[0]                                  # (tk, 2C)  compute dtype

        # Additive causal mask built ONCE per tile (shared by all heads).
        row = qi * tq + lax.broadcasted_iota(jnp.int32, (tq, tk), 0)
        col = kv * tk + lax.broadcasted_iota(jnp.int32, (tq, tk), 1)
        neg = jnp.where(row >= col, 0.0, -1e30).astype(jnp.float32)

        for h in range(n_head):                            # static unroll over heads
            qh = qblk[:, h * D:(h + 1) * D]                # (tq, D)
            kh = kvblk[:, h * D:(h + 1) * D]               # (tk, D)
            vh = kvblk[:, C + h * D:C + (h + 1) * D]       # (tk, D)

            # scores: contract over D (no materialized k.T), f32 accumulation.
            s = lax.dot_general(qh, kh, (((1,), (1,)), ((), ())),
                                preferred_element_type=jnp.float32)   # (tq, tk)
            s = s + neg

            m_prev = m_sc[h]                               # (tq, 1)
            m_new = jnp.maximum(m_prev, jnp.max(s, axis=-1, keepdims=True))
            alpha = jnp.exp(m_prev - m_new)
            p = jnp.exp(s - m_new)                         # f32; cast to bf16 for MXU
            l_sc[h] = alpha * l_sc[h] + jnp.sum(p, axis=-1, keepdims=True)
            acc_sc[h] = alpha * acc_sc[h] + jnp.dot(
                p.astype(vh.dtype), vh, preferred_element_type=jnp.float32)
            m_sc[h] = m_new

    # Finalize: normalize each head into the (tq, C) f32 scratch, then ONE K=C
    # projection (+ bias) and a single lane-dense output store.
    @pl.when(kv == last_kv)
    def _():
        for h in range(n_head):
            l_h = l_sc[h]
            inv_l = pl.reciprocal(l_h, approx=True)        # EUP
            inv_l = inv_l * (2.0 - l_h * inv_l)            # one Newton step -> ~f32
            y_sc[:, h * D:(h + 1) * D] = acc_sc[h] * inv_l
        y = y_sc[...].astype(wp_ref.dtype)                 # (tq, C) compute dtype
        out = jnp.dot(y, wp_ref[...],
                      preferred_element_type=jnp.float32) + bp_ref[...]
        o_ref[0] = out.astype(o_ref.dtype)


# --------------------------------------------------------------------------- #
# Wrapper
# --------------------------------------------------------------------------- #
def music_self_attention(x, params, n_head, *, compute_dtype=jnp.bfloat16,
                         tq=None, tk=None):
    """x: (B, T, C) float32.  params: PyTorch-style Linear weights (out,in) / biases (1,C)."""
    B, T, C = x.shape
    assert C % n_head == 0
    D = C // n_head
    scale = 1.0 / math.sqrt(D)

    # Pre-transpose to (in, out), fuse QKV, fold 1/sqrt(D) into the q slice.
    # Weights in compute dtype (bf16 by default); biases stay f32.
    wqkv = jnp.concatenate(
        [params["wq"].T * scale, params["wk"].T, params["wv"].T],
        axis=1).astype(compute_dtype)                               # (C, 3C)
    bqkv = jnp.concatenate(
        [params["bq"] * scale, params["bk"], params["bv"]],
        axis=1).astype(jnp.float32)                                 # (1, 3C)
    wp = params["wp"].T.astype(compute_dtype)                       # (C, C)
    bp = params["bp"].astype(jnp.float32)                           # (1, C)

    # Large q tiles cut K/V re-streaming; kv tiles decoupled.
    if tq is None:
        tq = _pick_tile(T, (512, 256, 128, 64, 32, 16, 8))
    if tk is None:
        tk = _pick_tile(T, (256, 128, 64, 32, 16, 8))
    tx = _pick_tile(T, (256, 128, 64, 32, 16, 8))
    assert T % tq == 0 and T % tk == 0 and T % tx == 0
    nq, nkv, nx = T // tq, T // tk, T // tx

    vmem_limit = 64 * 1024 * 1024   # fits v7x's 64 MiB physical VMEM

    # ---- Kernel 1: fused QKV projection -> q (B,T,C), k|v (B,T,2C) ----------
    q, kvt = pl.pallas_call(
        _qkv_kernel,
        out_shape=(jax.ShapeDtypeStruct((B, T, C), compute_dtype),
                   jax.ShapeDtypeStruct((B, T, 2 * C), compute_dtype)),
        grid=(B, nx),
        in_specs=[
            pl.BlockSpec((1, tx, C), lambda b, t: (b, t, 0)),
            pl.BlockSpec((C, 3 * C), lambda b, t: (0, 0)),          # resident weight
            pl.BlockSpec((1, 3 * C), lambda b, t: (0, 0)),
        ],
        out_specs=(pl.BlockSpec((1, tx, C), lambda b, t: (b, t, 0)),
                   pl.BlockSpec((1, tx, 2 * C), lambda b, t: (b, t, 0))),
        compiler_params=pltpu.CompilerParams(
            dimension_semantics=("parallel", "parallel"),
            vmem_limit_bytes=vmem_limit),
    )(x, wqkv, bqkv)

    # ---- Kernel 2: flash attention (heads in-kernel) + single projection ----
    def q_map(b, qi, kv):
        return (b, qi, 0)

    def kv_map(b, qi, kv):
        # Clamp fully-future kv tiles to the last needed tile: block index unchanged
        # -> no DMA issued for skipped steps.
        return (b, jnp.minimum(kv, (qi * tq + tq - 1) // tk), 0)

    out = pl.pallas_call(
        functools.partial(_flash_kernel, n_head=n_head, head_dim=D, tq=tq, tk=tk),
        out_shape=jax.ShapeDtypeStruct((B, T, C), x.dtype),
        grid=(B, nq, nkv),
        in_specs=[
            pl.BlockSpec((1, tq, C), q_map),                        # q (resident over kv)
            pl.BlockSpec((1, tk, 2 * C), kv_map),                   # k|v
            pl.BlockSpec((C, C), lambda b, qi, kv: (0, 0)),         # wp (resident)
            pl.BlockSpec((1, C), lambda b, qi, kv: (0, 0)),         # bp
        ],
        out_specs=pl.BlockSpec((1, tq, C), q_map),
        scratch_shapes=[
            pltpu.VMEM((n_head, tq, 1), jnp.float32),   # running max (per head)
            pltpu.VMEM((n_head, tq, 1), jnp.float32),   # running denom (per head)
            pltpu.VMEM((n_head, tq, D), jnp.float32),   # running numerator (per head)
            pltpu.VMEM((tq, C), jnp.float32),           # normalized y before projection
        ],
        compiler_params=pltpu.CompilerParams(
            # Leading (b, qi) parallel axes shard across v7x's 2 TensorCores.
            dimension_semantics=("parallel", "parallel", "arbitrary"),
            vmem_limit_bytes=vmem_limit),
    )(q, kvt, wp, bp)
    return out


# --------------------------------------------------------------------------- #
# Pure-JAX reference mirroring the PyTorch forward (eval mode).
# --------------------------------------------------------------------------- #
def _reference(x, params, n_head):
    B, T, C = x.shape
    D = C // n_head

    def lin(x, w, b):
        return x @ w.T + b

    q = lin(x, params["wq"], params["bq"]).reshape(B, T, n_head, D).transpose(0, 2, 1, 3)
    k = lin(x, params["wk"], params["bk"]).reshape(B, T, n_head, D).transpose(0, 2, 1, 3)
    v = lin(x, params["wv"], params["bv"]).reshape(B, T, n_head, D).transpose(0, 2, 1, 3)

    att = jnp.einsum("bhtd,bhsd->bhts", q, k) * (1.0 / math.sqrt(D))
    mask = jnp.tril(jnp.ones((T, T), dtype=bool))
    att = jnp.where(mask[None, None], att, -jnp.inf)
    att = jax.nn.softmax(att, axis=-1)
    y = jnp.einsum("bhts,bhsd->bhtd", att, v)
    y = y.transpose(0, 2, 1, 3).reshape(B, T, C)
    return lin(y, params["wp"], params["bp"])


def _init_params(key, n_embd):
    """Deterministic PyTorch-Linear-like init: U(-1/sqrt(fan_in), 1/sqrt(fan_in))."""
    bound = 1.0 / math.sqrt(n_embd)
    names = ["wq", "bq", "wk", "bk", "wv", "bv", "wp", "bp"]
    keys = jax.random.split(key, len(names))
    params = {}
    for name, kk in zip(names, keys):
        shape = (n_embd, n_embd) if name.startswith("w") else (1, n_embd)
        params[name] = jax.random.uniform(kk, shape, jnp.float32, -bound, bound)
    return params


if __name__ == "__main__":
    # Small config consistent with the module: n_embd % n_head == 0, block_size >= T.
    # T=32 with tq=16 / tk=8 exercises multi-tile, decoupled tiles and causal skipping.
    B, T, C, n_head = 2, 32, 32, 4

    key = jax.random.PRNGKey(0)
    kx, kp = jax.random.split(key)
    x = jax.random.normal(kx, (B, T, C), dtype=jnp.float32)
    params = _init_params(kp, C)

    ref = _reference(x, params, n_head)

    # f32 compute path: validates the kernel structure at tight tolerance.
    out_f32 = music_self_attention(x, params, n_head,
                                   compute_dtype=jnp.float32, tq=16, tk=8)
    out_f32 = jax.block_until_ready(out_f32)
    assert out_f32.shape == (B, T, C)
    assert jnp.allclose(out_f32, ref, atol=1e-3, rtol=1e-3), "f32 mismatch vs reference"

    # bf16 fast path (default): tolerance appropriate for bf16 operands.
    out_bf16 = music_self_attention(x, params, n_head, tq=16, tk=8)
    out_bf16 = jax.block_until_ready(out_bf16)
    assert jnp.allclose(out_bf16, ref, atol=3e-2, rtol=3e-2), "bf16 mismatch vs reference"

    # TODO(synk): attn_drop / resid_drop omitted (eval-mode identity).
    print("KERNEL_OK")
</pallas_src>

<mosaic_0001>
module attributes {stable_mosaic.version = 11 : i64} {
  func.func @_qkv_kernel(%arg0: i32, %arg1: i32, %arg2: memref<1x32x32xf32, #tpu.memory_space<vmem>>, %arg3: memref<32x96xf32, #tpu.memory_space<vmem>>, %arg4: memref<1x96xf32, #tpu.memory_space<vmem>>, %arg5: memref<1x32x32xf32, #tpu.memory_space<vmem>>, %arg6: memref<1x32x64xf32, #tpu.memory_space<vmem>>) attributes {dimension_semantics = [#tpu.dimension_semantics<parallel>, #tpu.dimension_semantics<parallel>], iteration_bounds = array<i64: 2, 1>, scalar_prefetch = 0 : i64, scratch_operands = 0 : i64, tpu.core_type = #tpu.core_type<tc>, window_params = [{transform_indices = @transform_0, window_bounds = array<i64: 1, 32, 32>}, {pipeline_mode = #tpu.pipeline_mode<synchronous>, transform_indices = @transform_1, window_bounds = array<i64: 32, 96>}, {pipeline_mode = #tpu.pipeline_mode<synchronous>, transform_indices = @transform_2, window_bounds = array<i64: 1, 96>}, {transform_indices = @transform_3, window_bounds = array<i64: 1, 32, 32>}, {transform_indices = @transform_4, window_bounds = array<i64: 1, 32, 64>}]} {
    %c0 = arith.constant 0 : index
    %c0_0 = arith.constant 0 : index
    %c0_1 = arith.constant 0 : index
    %0 = vector.load %arg2[%c0, %c0_0, %c0_1] : memref<1x32x32xf32, #tpu.memory_space<vmem>>, vector<1x32x32xf32>
    %1 = vector.shape_cast %0 : vector<1x32x32xf32> to vector<32x32xf32>
    %c0_2 = arith.constant 0 : index
    %c0_3 = arith.constant 0 : index
    %2 = vector.load %arg3[%c0_2, %c0_3] : memref<32x96xf32, #tpu.memory_space<vmem>>, vector<32x96xf32>
    %cst = arith.constant dense<0.000000e+00> : vector<32x96xf32>
    %3 = tpu.matmul %1, %2, %cst {dimension_numbers = #tpu.dot_dimension_numbers<[1], [0], [0], [1], [0, 0, 1, 1], [], []>} : vector<32x32xf32>, vector<32x96xf32>, vector<32x96xf32> -> vector<32x96xf32>
    %c0_4 = arith.constant 0 : index
    %c0_5 = arith.constant 0 : index
    %4 = vector.load %arg4[%c0_4, %c0_5] : memref<1x96xf32, #tpu.memory_space<vmem>>, vector<1x96xf32>
    %5 = vector.broadcast %4 : vector<1x96xf32> to vector<32x96xf32>
    %6 = arith.addf %3, %5 : vector<32x96xf32>
    %7 = vector.extract_strided_slice %6 {offsets = [0, 0], sizes = [32, 32], strides = [1, 1]} : vector<32x96xf32> to vector<32x32xf32>
    %c0_6 = arith.constant 0 : index
    %c0_7 = arith.constant 0 : index
    %c0_8 = arith.constant 0 : index
    %8 = vector.load %arg5[%c0_6, %c0_7, %c0_8] : memref<1x32x32xf32, #tpu.memory_space<vmem>>, vector<1x32x32xf32>
    %9 = vector.shape_cast %8 : vector<1x32x32xf32> to vector<32x32xf32>
    %10 = vector.shape_cast %7 : vector<32x32xf32> to vector<1x32x32xf32>
    tpu.vector_store %arg5[%c0_6, %c0_7, %c0_8], %10 {strides = array<i32>} : memref<1x32x32xf32, #tpu.memory_space<vmem>>, vector<1x32x32xf32>,
    %11 = vector.extract_strided_slice %6 {offsets = [0, 32], sizes = [32, 64], strides = [1, 1]} : vector<32x96xf32> to vector<32x64xf32>
    %c0_9 = arith.constant 0 : index
    %c0_10 = arith.constant 0 : index
    %c0_11 = arith.constant 0 : index
    %12 = vector.load %arg6[%c0_9, %c0_10, %c0_11] : memref<1x32x64xf32, #tpu.memory_space<vmem>>, vector<1x32x64xf32>
    %13 = vector.shape_cast %12 : vector<1x32x64xf32> to vector<32x64xf32>
    %14 = vector.shape_cast %11 : vector<32x64xf32> to vector<1x32x64xf32>
    tpu.vector_store %arg6[%c0_9, %c0_10, %c0_11], %14 {strides = array<i32>} : memref<1x32x64xf32, #tpu.memory_space<vmem>>, vector<1x32x64xf32>,
    return
  }
  func.func @transform_0(%arg0: i32, %arg1: i32) -> (i32, i32, i32) {
    %c0_i32 = arith.constant 0 : i32
    %c0_i32_0 = arith.constant 0 : i32
    return %arg0, %arg1, %c0_i32 : i32, i32, i32
  }
  func.func @transform_1(%arg0: i32, %arg1: i32) -> (i32, i32) {
    %c0_i32 = arith.constant 0 : i32
    %c0_i32_0 = arith.constant 0 : i32
    %c0_i32_1 = arith.constant 0 : i32
    return %c0_i32, %c0_i32_0 : i32, i32
  }
  func.func @transform_2(%arg0: i32, %arg1: i32) -> (i32, i32) {
    %c0_i32 = arith.constant 0 : i32
    %c0_i32_0 = arith.constant 0 : i32
    %c0_i32_1 = arith.constant 0 : i32
    return %c0_i32, %c0_i32_0 : i32, i32
  }
  func.func @transform_3(%arg0: i32, %arg1: i32) -> (i32, i32, i32) {
    %c0_i32 = arith.constant 0 : i32
    %c0_i32_0 = arith.constant 0 : i32
    return %arg0, %arg1, %c0_i32 : i32, i32, i32
  }
  func.func @transform_4(%arg0: i32, %arg1: i32) -> (i32, i32, i32) {
    %c0_i32 = arith.constant 0 : i32
    %c0_i32_0 = arith.constant 0 : i32
    return %arg0, %arg1, %c0_i32 : i32, i32, i32
  }
}

</mosaic_0001>

<bundles_post_ra>
// kernel: tpu_custom_call.1
= control target key start
LH: loop header
LB: loop body
LE: loop exit
PB: predicated region body
PF: predicated region fallthrough
CT: control target
= control target key end

     0   :  { %10 = vsyncpa [#allocation3], 0  ;;  %s1314_s0 = inlined_call_operand.hbm [shape: f32[2,32,32], index: 0, kind: input, shape index: {}]   ;;  %s1315_s1 = inlined_call_operand.hbm [shape: f32[32,96], index: 1, kind: input, shape index: {}]   ;;  %s1316_s2 = inlined_call_operand.hbm [shape: f32[1,96], index: 2, kind: input, shape index: {}]   ;;  %s1317_s3 = inlined_call_operand.hbm [shape: f32[2,32,32], index: 3, kind: output, shape index: {0}]   ;;  %s1318_s4 = inlined_call_operand.hbm [shape: f32[2,32,64], index: 4, kind: output, shape index: {1}]  }
   0x1   :  { %12 = vsyncpa [#allocation3 + $0x1], 0 }
   0x2   :  { %13 = vsyncpa [#allocation6], 0 }
   0x3   :  { %14 = vsyncpa [#allocation4], 0 }
   0x4   :  { %16 = vsyncpa [#allocation4 + $0x1], 0 }
   0x5   :  { %17 = vsyncpa [#allocation10], 0 }
   0x6   :  { %19 = vsyncpa [#allocation10 + $0x1], 0  ;;  %s994_s15 = smov 0   ;;  %s996_s16 = smov 0  }
   0x7   :  { %s998_s17 = smov 0   ;;  %s1000_s18 = smov 0  }
   0x8   :  { %s1002_s19 = smov 0   ;;  %s1004_s20 = smov 0  }
   0x9 LB: > { %s595_s21 = sadd.s32 4294967295, %s957_s20   ;;  %s596_s22 = sadd.s32 4294967294, %s957_s20   ;;  %s957_s20 = sphi %s1004_s20, %s25_s20   ;;  %s953_s19 = sphi %s1002_s19, %s1340_s19   ;;  %s949_s18 = sphi %s1000_s18, %s1339_s18   ;;  %s945_s17 = sphi %s998_s17, %s1338_s17   ;;  %s941_s16 = sphi %s996_s16, %s1337_s16   ;;  %s937_s15 = sphi %s994_s15, %s1336_s15  }
   0xa   : > { %p59_p0 = scmp.ne.s32.totalorder %s941_s16, %s937_s15  ;;  %p1028_p1 = scmp.eq.s32.totalorder %s595_s21, 0 }
   0xb   : > { %p1032_p2 = scmp.eq.s32.totalorder %s595_s21, 1  ;;  %p133_p3 = scmp.eq.s32.totalorder %s596_s22, 1 }
   0xc   : > { %s1323_s23 = scalar_select %p1028_p1, 1, 0 }
   0xd   : > { %p1038_p4 = por %p1028_p1, %p59_p0  ;;  %p597_p5 = scmp.ge.s32.totalorder %s957_s20, 1 }
   0xe   : > { %p1043_p6 = por %p133_p3, %p59_p0  ;;  %p168_p7 = scmp.lt.s32.totalorder %s957_s20, 3 }
   0xf   : > { %s1325_s25 = scalar_select %p1038_p4, 1, 0 }
  0x10   : > { %s1326_s26 = scalar_select %p1043_p6, 1, 0 }
  0x11   : > { %p1048_p8 = pnand %p597_p5, %p168_p7  ;;  %s959_s28 = smov [#allocation5]  }
  0x12   : > { %s180_s29 = sshll.u32 %s959_s28, 4  ;;  %s960_s5 = smov [#allocation7]   ;;  %s1052_s29 = int_to_ptr.vmem [resolvable:$true] %s180_s29 }
  0x13   : > { %p674_p9 = pneg %p1048_p8  ;;  %s194_s6 = sshll.u32 %s960_s5, 4  ;;  %s1063_s6 = int_to_ptr.vmem [resolvable:$true] %s194_s6 }
  0x14   : > { %s753_s9 = scalar_lea.hbm %s1315_s1, 512 }
  0x15   : > { %p1059_p11 = pnand %p674_p9, %p1028_p1  ;;  %p754_p12 = scmp.ne.s32.totalorder %s1315_s1, %s753_s9 }
  0x16   : > { %p760_p5 = scmp.lt.u32.totalorder %s753_s9, %s1315_s1 }
  0x17   : > { %p755_p13 = pneg %p1059_p11 }
  0x19   : > { %p756_p0 = pnand %p755_p13, %p754_p12 }
  0x1b   : > { %p757_p3 = pneg %p756_p0 }
  0x1d   : > { %p762_p7 = pnand %p760_p5, %p757_p3 }
  0x1f   : > { %765 = shalt.err (!%p762_p7)
}
  0x20   : > { %s766_s14 = scalar_lea.vmem %s1052_s29, 512  ;;  %p774_p1 = scmp.lt.s32.totalorder %s1052_s29, %s1052_s29 }
  0x21   : > { %p767_p9 = scmp.ne.s32.totalorder %s1052_s29, %s766_s14  ;;  %p775_p12 = scmp.lt.s32.totalorder %s766_s14, %s766_s14 }
  0x23   : > { %p769_p10 = pnand %p767_p9, %p755_p13  ;;  %p776_p0 = por %p775_p12, %p774_p1 }
  0x25   : > { %p770_p6 = pneg %p769_p10 }
  0x27   : > { %p777_p4 = pnand %p776_p0, %p770_p6 }
  0x29   : > { %780 = shalt.err (!%p777_p4)
}
  0x2a   : > { %s961_s21 = smov 128   ;;  %s962_s22 = smov 8  }
  0x2b   : > { %677 = dma.hbm_to_vmem [thread:$0]  (!%p1059_p11), %s1315_s1, 512, %s1052_s29, [#allocation6], %s961_s21, %s961_s21, %s962_s22  }
  0x2c   : > { %s781_s9 = scalar_lea.hbm %s1316_s2, 16 }
  0x2d   : > { %p782_p1 = scmp.ne.s32.totalorder %s1316_s2, %s781_s9  ;;  %p788_p10 = scmp.lt.u32.totalorder %s781_s9, %s1316_s2 }
  0x2f   : > { %p784_p4 = pnand %p782_p1, %p755_p13 }
  0x31   : > { %p785_p6 = pneg %p784_p4 }
  0x33   : > { %p790_p3 = pnand %p788_p10, %p785_p6 }
  0x35   : > { %793 = shalt.err (!%p790_p3)
}
  0x36   : > { %s794_s29 = scalar_lea.vmem %s1063_s6, 16  ;;  %s801_s14 = scalar_lea.vmem %s1063_s6, 32 }
  0x37   : > { %p795_p5 = scmp.ne.s32.totalorder %s1063_s6, %s794_s29  ;;  %p802_p12 = scmp.lt.s32.totalorder %s1063_s6, %s1063_s6 }
  0x38   : > { %p803_p0 = scmp.lt.s32.totalorder %s801_s14, %s794_s29 }
  0x39   : > { %p797_p7 = pnand %p795_p5, %p755_p13 }
  0x3a   : > { %p804_p1 = por %p803_p0, %p802_p12 }
  0x3b   : > { %p798_p9 = pneg %p797_p7 }
  0x3d   : > { %p805_p4 = pnand %p804_p1, %p798_p9 }
  0x3f   : > { %808 = shalt.err (!%p805_p4)
}
  0x40   : > { %680 = dma.hbm_to_vmem [thread:$0]  (!%p1059_p11), %s1316_s2, 16, %s1063_s6, [#allocation6]  }
  0x41   : > { %s37_s7 = sadd.s32 1, %s953_s19  ;;  %s46_s8 = sadd.s32 1, %s945_s17 }
  0x42   : > { %p39_p13 = scmp.ge.s32.totalorder %s37_s7, 2  ;;  %p53_p6 = scmp.ne.s32.totalorder %s945_s17, %s941_s16 }
  0x43   : > { %p54_p10 = scmp.eq.s32.totalorder %s957_s20, 0  ;;  %p694_p3 = scmp.lt.s32.totalorder %s957_s20, 2 }
  0x44   : > { %s1342_s7 = smov (%p39_p13, %s37_s7), 0  ;;  %p1131_p7 = por %p1032_p2, %p53_p6 }
  0x45   : > { %p55_p5 = por %p54_p10, %p53_p6  ;;  %s41_s9 = ssub.s32 %s953_s19, %s1342_s7 }
  0x46   : > { %s1329_s30 = scalar_select %p1131_p7, 1, 0 }
  0x47   : > { %s205_s10 = sand.u32 1, %s945_s17   ;;  %p44_p9 = scmp.eq.s32.totalorder %s41_s9, 0 }
  0x48   : > { %s601_s6 = sshll.u32 %s205_s10, 5  ;;  %s623_s11 = sshll.u32 %s953_s19, 9 }
  0x49   : > { %s1140_s12 = scalar_select %p44_p9, %s945_s17, %s46_s8  }
  0x4a   : > { %s1145_s14 = scalar_lea.hbm %s1314_s0, %s623_s11  ;;  %s209_s24 = scalar_lea.vmem [#allocation2], %s601_s6 }
  0x4b   : > { %s218_s28 = sshll.u32 %s209_s24, 4  ;;  %p1149_p2 = pnand %p694_p3, %p55_p5  ;;  %s1153_s28 = int_to_ptr.vmem [resolvable:$true] %s218_s28 }
  0x4c   : > { %s1155_s8 = scalar_lea.sflag [#allocation3], %s205_s10  ;;  %s809_s9 = scalar_lea.hbm %s1145_s14, 512 }
  0x4d   : > { %p810_p11 = scmp.ne.s32.totalorder %s1145_s14, %s809_s9  ;;  %p811_p12 = pneg %p1149_p2 }
  0x4e   : > { %s814_s13 = scalar_lea.hbm %s1314_s0, 1024  ;;  %p815_p4 = scmp.lt.u32.totalorder %s1145_s14, %s1314_s0 }
  0x4f   : > { %p812_p0 = pnand %p811_p12, %p810_p11  ;;  %p816_p13 = scmp.lt.u32.totalorder %s814_s13, %s809_s9 }
  0x50   : > { %p818_p10 = scmp.lt.u32.totalorder %s809_s9, %s1145_s14 }
  0x51   : > { %p813_p1 = pneg %p812_p0  ;;  %p817_p6 = por %p816_p13, %p815_p4 }
  0x53   : > { %p819_p3 = por %p818_p10, %p817_p6 }
  0x55   : > { %p820_p5 = pnand %p819_p3, %p813_p1 }
  0x57   : > { %823 = shalt.err (!%p820_p5)
}
  0x58   : > { %s824_s10 = scalar_lea.vmem %s1153_s28, 512  ;;  %s963_s6 = smov [#allocation2]  }
  0x59   : > { %p825_p9 = scmp.ne.s32.totalorder %s1153_s28, %s824_s10  ;;  %s829_s11 = sshll.u32 %s963_s6, 4  ;;  %s830_s11 = int_to_ptr.vmem [resolvable:$false] %s829_s11 }
  0x5a   : > { %s831_s29 = scalar_lea.vmem %s830_s11, 1024  ;;  %p832_p7 = scmp.lt.s32.totalorder %s1153_s28, %s830_s11 }
  0x5b   : > { %p827_p11 = pnand %p825_p9, %p811_p12  ;;  %p833_p4 = scmp.lt.s32.totalorder %s831_s29, %s824_s10 }
  0x5d   : > { %p828_p0 = pneg %p827_p11  ;;  %p834_p13 = por %p833_p4, %p832_p7 }
  0x5f   : > { %p835_p6 = pnand %p834_p13, %p828_p0 }
  0x61   : > { %838 = shalt.err (!%p835_p6)
}
  0x62   : > { %684 = dma.hbm_to_vmem [thread:$0]  (!%p1149_p2), %s1145_s14, 512, %s1153_s28, %s1155_s8, %s961_s21, %s961_s21, %s962_s22  }
  0x63   : > { %230 = sbr.rel (%p1048_p8) target bundleno = 479 (0x1df), region = 32  ;;  %s1189_s9 = sand.u32 (!%p1048_p8), 1, %s941_s16  }
  0x64   : > { %s1192_s13 = sshll.u32 (!%p1048_p8), %s1189_s9, 5  ;;  %s233_s5 = scalar_lea.sflag (!%p1048_p8), [#allocation3], %s1189_s9 }
  0x65   : > { %s236_s24 = scalar_lea.vmem (!%p1048_p8), [#allocation2], %s1192_s13  ;;  %p1331_p7 = scmp.ne.s32.totalorder (!%p1048_p8), %s1325_s25, 0 }
  0x6a   : > { %920 = dma.done.wait (%p1331_p7), %s233_s5, 512  }
  0x6b   : > { %922 = vsyncadd (%p1331_p7), %s233_s5, 4294966784  ;;  %p1332_p2 = scmp.ne.s32.totalorder %s1323_s23, 0 }
  0x6d   : > { %924 = dma.done.wait (%p1332_p2), [#allocation6], 528  }
  0x6e   : > { %926 = vsyncadd (%p1332_p2), [#allocation6], 4294966768  ;;  %vm292_vm0 = vcmask 261120   ;;  %v281_v0 = vld [vmem:[#allocation5] sm:$0xff]  ;;  %v282_v1 = vld [vmem:[#allocation5 + $0x8] sm:$0xff]  ;;  %s266_s23 = scalar_lea.vmem [#allocation8], %s1192_s13 }
  0x6f   : > { %v283_v2 = vld [vmem:[#allocation5 + $0x10] sm:$0xff]  ;;  %v648_v3 = vpack.c.bf16 %v282_v1, %v281_v0  ;;  %v284_v4 = vld [vmem:[#allocation5 + $0x18] sm:$0xff]  ;;  %v277_v5 = vld [vmem:[%s236_s24] sm:$0xff]  ;;  %s436_s25 = sshll.u32 %s266_s23, 4  ;;  %s624_s27 = sshll.u32 %s949_s18, 9  ;;  %s1210_s25 = int_to_ptr.vmem [resolvable:$true] %s436_s25 }
  0x70   : > { %v279_v6 = vld [vmem:[%s236_s24 + $0x10] sm:$0xff]  ;;  %v652_v7 = vpack.c.bf16 %v284_v4, %v283_v2  ;;  %642 = vmatprep.mubr.msk.f32.mxu0 %vm292_vm0, %v277_v5  ;;  %v278_v8 = vld [vmem:[%s236_s24 + $0x8] sm:$0xff]  ;;  %v280_v9 = vld [vmem:[%s236_s24 + $0x18] sm:$0xff]  ;;  %s1217_s14 = scalar_lea.hbm %s1317_s3, %s624_s27  ;;  %s964_s28 = smov 96  }
  0x71   : > { %645 = vmatprep.mubr.msk.f32.mxu1 %vm292_vm0, %v279_v6  ;;  %649 = vmatprep.subr.bf16.mxu0 %v648_v3  ;;  %v610_v10 = vld [vmem:[#allocation7] ss:$0 sm:$0xff]  ;;  %s416_s8 = scalar_lea.sflag [#allocation4], %s1189_s9  ;;  %s839_s10 = scalar_lea.vmem %s1210_s25, 512 }
  0x72   : > { %656 = vmatprep.subr.bf16.mxu1 %v648_v3  ;;  %651 = vmatpush3.bf16.msra.mxu0 %v648_v3  ;;  %p840_p8 = scmp.ne.s32.totalorder %s1210_s25, %s839_s10  ;;  %p1333_p12 = scmp.ne.s32.totalorder %s1329_s30, 0 }
  0x73   : > { %658 = vmatpush3.bf16.msra.mxu1 %v648_v3  ;;  %653 = vmatprep.subr.bf16.mxu0 %v652_v7  ;;  %s965_s6 = smov [#allocation8]  }
  0x74   : > { %657 = vmatprep.subr.bf16.mxu1 %v652_v7  ;;  %p841_p1 = pnand %p840_p8, %p1333_p12  ;;  %s843_s11 = sshll.u32 %s965_s6, 4  ;;  %s844_s11 = int_to_ptr.vmem [resolvable:$false] %s843_s11 }
  0x75   : > { %s845_s29 = scalar_lea.vmem %s844_s11, 1024  ;;  %p846_p3 = scmp.lt.s32.totalorder %s1210_s25, %s844_s11 }
  0x76   : > { %655 = vmatpush3.bf16.msra.mxu0 %v652_v7  ;;  %p842_p10 = pneg %p841_p1  ;;  %p847_p5 = scmp.lt.s32.totalorder %s845_s29, %s839_s10 }
  0x77   : > { %659 = vmatpush3.bf16.msra.mxu1 %v652_v7 }
  0x78   : > { %p848_p9 = por %p847_p5, %p846_p3 }
  0x79   : > { %643 = vmatmul.mubr.msk.f32.vlgmr.msra.gmra.mrb[0].mxu0 %vm292_vm0, %v278_v8 }
  0x7a   : > { %646 = vmatmul.mubr.msk.f32.vlgmr.msra.gmra.mrb[0].mxu1 %vm292_vm0, %v280_v9  ;;  %p849_p11 = pnand %p848_p9, %p842_p10 }
 0x14c   : > { %v644_v11 = vpop.f32.mrb[0].mxu0 }
 0x14d   : > { %v647_v12 = vpop.f32.mrb[0].mxu1  ;;  %v377_v13 = vadd.f32 %v644_v11, %v610_v10  ;;  %v371_v15 = vpop.f32.mrb[1].mxu0 }
 0x14e   : > { %v387_v14 = vadd.f32 %v647_v12, %v610_v10  ;;  %v381_v16 = vpop.f32.mrb[1].mxu1  ;;  %v372_v17 = vadd.f32 %v610_v10, %v371_v15 }
 0x14f   : > { %v382_v18 = vadd.f32 %v610_v10, %v381_v16  ;;  %391 = vst.msk [vmem:[%s266_s23 + $0x8] sm:$0xff] %vm292_vm0, %v377_v13 }
 0x150   : > { %393 = vst.msk [vmem:[%s266_s23 + $0x18] sm:$0xff] %vm292_vm0, %v387_v14  ;;  %390 = vst.msk [vmem:[%s266_s23] sm:$0xff] %vm292_vm0, %v372_v17  ;;  %398 = vrot.lane.b32.xlu0 %v372_v17, %s964_s28 }
 0x151   : > { %392 = vst.msk [vmem:[%s266_s23 + $0x10] sm:$0xff] %vm292_vm0, %v382_v18  ;;  %402 = vrot.lane.b32.xlu1 %v382_v18, %s964_s28 }
 0x152   : > { %852 = shalt.err (!%p849_p11)
}
 0x153   : > { %s853_s5 = scalar_lea.hbm %s1217_s14, 512  ;;  %s857_s21 = scalar_lea.hbm %s1317_s3, 1024 }
 0x154   : > { %p854_p0 = scmp.ne.s32.totalorder %s1217_s14, %s853_s5  ;;  %p858_p6 = scmp.lt.u32.totalorder %s1217_s14, %s1317_s3 }
 0x155   : > { %p859_p7 = scmp.lt.u32.totalorder %s857_s21, %s853_s5  ;;  %p861_p8 = scmp.lt.u32.totalorder %s853_s5, %s1217_s14 }
 0x156   : > { %p855_p4 = pnand %p854_p0, %p1333_p12 }
 0x157   : > { %p860_p2 = por %p859_p7, %p858_p6 }
 0x158   : > { %p856_p13 = pneg %p855_p4 }
 0x159   : > { %p862_p1 = por %p861_p8, %p860_p2 }
 0x15b   : > { %p863_p10 = pnand %p862_p1, %p856_p13 }
 0x15d   : > { %866 = shalt.err (!%p863_p10)
}
 0x15e   : > { %s966_s10 = smov 128   ;;  %s967_s11 = smov 8   ;;  %404 = vrot.lane.b32.xlu1 %v387_v14, %s964_s28  ;;  %400 = vrot.lane.b32.xlu0 %v377_v13, %s964_s28  ;;  %vm410_vm1 = vcmask 523264  }
 0x15f   : > { %670 = dma.vmem_to_hbm [thread:$0]  (%p1333_p12), %s1210_s25, 512, %s1217_s14, %s416_s8, %s966_s10, %s966_s10, %s967_s11  }
 0x160   : > { %s273_s29 = scalar_lea.vmem [#allocation9], %s1192_s13  ;;  %s1262_s25 = scalar_lea.hbm %s1318_s4, %s624_s27 }
 0x161   : > { %s454_s5 = sshll.u32 %s273_s29, 4  ;;  %s421_s13 = scalar_lea.sflag [#allocation10], %s1189_s9  ;;  %s1255_s5 = int_to_ptr.vmem [resolvable:$true] %s454_s5 }
 0x162   : > { %s867_s14 = scalar_lea.vmem %s1255_s5, 512  ;;  %s968_s28 = smov [#allocation9]  }
 0x163   : > { %p868_p3 = scmp.ne.s32.totalorder %s1255_s5, %s867_s14  ;;  %s871_s18 = sshll.u32 %s968_s28, 4  ;;  %s872_s18 = int_to_ptr.vmem [resolvable:$false] %s871_s18 }
 0x164   : > { %s873_s8 = scalar_lea.vmem %s872_s18, 1024  ;;  %p874_p11 = scmp.lt.s32.totalorder %s1255_s5, %s872_s18 }
 0x165   : > { %p869_p5 = pnand %p868_p3, %p1333_p12  ;;  %p875_p0 = scmp.lt.s32.totalorder %s873_s8, %s867_s14 }
 0x167   : > { %p870_p9 = pneg %p869_p5  ;;  %p876_p4 = por %p875_p0, %p874_p11 }
 0x169   : > { %p877_p13 = pnand %p876_p4, %p870_p9 }
 0x1c2   : > { %v399_v20 = vpop.permute.xlu0 %398 }
 0x1c3   : > { %v403_v19 = vpop.permute.xlu1 %402  ;;  %411 = vst.msk [vmem:[%s273_s29] sm:$0xff] %vm410_vm1, %v399_v20 }
 0x1c4   : > { %413 = vst.msk [vmem:[%s273_s29 + $0x10] sm:$0xff] %vm410_vm1, %v403_v19 }
 0x1d0   : > { %v405_v21 = vpop.permute.xlu1 %404  ;;  %v401_v22 = vpop.permute.xlu0 %400 }
 0x1d1   : > { %414 = vst.msk [vmem:[%s273_s29 + $0x18] sm:$0xff] %vm410_vm1, %v405_v21  ;;  %412 = vst.msk [vmem:[%s273_s29 + $0x8] sm:$0xff] %vm410_vm1, %v401_v22 }
 0x1d2   : > { %880 = shalt.err (!%p877_p13)
}
 0x1d3   : > { %s881_s27 = scalar_lea.hbm %s1262_s25, 512  ;;  %s885_s6 = scalar_lea.hbm %s1318_s4, 1024 }
 0x1d4   : > { %p882_p6 = scmp.ne.s32.totalorder %s1262_s25, %s881_s27  ;;  %p886_p8 = scmp.lt.u32.totalorder %s1262_s25, %s1318_s4 }
 0x1d5   : > { %p887_p1 = scmp.lt.u32.totalorder %s885_s6, %s881_s27  ;;  %p889_p3 = scmp.lt.u32.totalorder %s881_s27, %s1262_s25 }
 0x1d6   : > { %p883_p7 = pnand %p882_p6, %p1333_p12 }
 0x1d7   : > { %p888_p10 = por %p887_p1, %p886_p8 }
 0x1d8   : > { %p884_p2 = pneg %p883_p7 }
 0x1d9   : > { %p890_p5 = por %p889_p3, %p888_p10 }
 0x1db   : > { %p891_p9 = pnand %p890_p5, %p884_p2 }
 0x1dd   : > { %894 = shalt.err (!%p891_p9)
}
 0x1de   : > { %671 = dma.vmem_to_hbm [thread:$0]  (%p1333_p12), %s1255_s5, 512, %s1262_s25, %s421_s13, %s966_s10, %s966_s10, %s967_s11  }
 0x1df PF: > { %s469_s23 = sand.u32 1, %s937_s15   ;;  %p1334_p11 = scmp.ne.s32.totalorder %s1326_s26, 0 }
 0x1e0   : > { %p1335_p0 = scmp.ge.s32.totalorder %s957_s20, 2  ;;  %s470_s14 = scalar_lea.sflag [#allocation4], %s469_s23 }
 0x1e2   : > { %p686_p4 = pnand %p1335_p0, %p1334_p11 }
 0x1e4   : > { %928 = dma.done.wait (!%p686_p4), %s470_s14, 512  }
 0x1e5   : > { %930 = vsyncadd (!%p686_p4), %s470_s14, 4294966784  ;;  %s479_s30 = scalar_lea.sflag [#allocation10], %s469_s23 }
 0x1e6   : > { %932 = dma.done.wait (!%p686_p4), %s479_s30, 512  }
 0x1e7   : > { %934 = vsyncadd (!%p686_p4), %s479_s30, 4294966784  ;;  %s25_s20 = sadd.s32 1, %s957_s20   ;;  %s1336_s15 = smov %s941_s16 }
 0x1e8   : > { %p22_p13 = scmp.ge.s32.totalorder %s25_s20, 4   ;;  %s1337_s16 = smov %s945_s17 }
 0x1e9   : > { %s1338_s17 = smov %s1140_s12  ;;  %s1339_s18 = smov %s953_s19 }
 0x1ea   : > { %s1340_s19 = smov %s1342_s7  ;;  %24 = sbr.rel (!%p22_p13) target bundleno = 9 (0x9), region = 102 }
 0x1f1   :  { %484 = vsyncpa [#allocation3], 1 }
 0x1f2   :  { %486 = vsyncpa [#allocation3 + $0x1], 1 }
 0x1f3   :  { %487 = vsyncpa [#allocation6], 1 }
 0x1f4   :  { %488 = vsyncpa [#allocation4], 1 }
 0x1f5   :  { %490 = vsyncpa [#allocation4 + $0x1], 1 }
 0x1f6   :  { %491 = vsyncpa [#allocation10], 1 }
 0x1f7   :  { %493 = vsyncpa [#allocation10 + $0x1], 1 }

</bundles_post_ra>
